<compile_context>
chip_gen: v6e
topology: v6e:2x2x1
jax: 0.10.0
libtpu: 0.0.40
codegen_flags: <defaults>
</compile_context>

<pallas_src>
import functools

import numpy as np
import jax
import jax.numpy as jnp
from jax import lax
from jax.experimental import pallas as pl
from jax.experimental.pallas import tpu as pltpu


def conv_padding(kernel_size: int, stride: int, dilation: int = 1) -> int:
    return (stride - 1 + dilation * (kernel_size - 1)) // 2


def _round_up(v: int, m: int) -> int:
    return (v + m - 1) // m * m


def _sublane(itemsize: int) -> int:
    return {4: 8, 2: 16, 1: 32}.get(itemsize, 8)


def _vmem_capacity_bytes() -> int:
    try:
        info = pltpu.get_tpu_info()
        cap = int(getattr(info, "vmem_capacity_bytes", 0))
        if cap > 0:
            return cap
    except Exception:
        pass
    return 64 << 20  # conservative default (v7x per-core VMEM)


def _blurpool_kernel(x_ref, aux_ref, o_ref, *, coeffs, stride, p,
                     pre_cnt, main_cnt, post_cnt, th_out, w, w_out):
    """Blur one (1, th_in, W, CT) row tile into (1, th_out, W_out, CT).

    x_ref   : (1, th_in, W, CT)    main input rows (original, unpadded coords)
    aux_ref : (1, 1, A, W, CT)     pre/post halo + reflect rows (wrapper-gathered)
    o_ref   : (1, th_out, W_out, CT)
    """
    k = len(coeffs)

    # Assemble the (L, W, CT) padded-row window for this tile (input dtype;
    # the f32 cast is folded into each tap below).
    pieces = []
    if pre_cnt or post_cnt:
        aux = aux_ref[0, 0]
    if pre_cnt:
        pieces.append(aux[:pre_cnt])
    if main_cnt:
        pieces.append(x_ref[0, :main_cnt])
    if post_cnt:
        pieces.append(aux[pre_cnt:pre_cnt + post_cnt])
    rows = pieces[0] if len(pieces) == 1 else jnp.concatenate(pieces, axis=0)

    # ---- vertical (H) pass: k taps; stride sits on the free leading axis ----
    span = (th_out - 1) * stride + 1
    vacc = coeffs[0] * rows[0:span:stride].astype(jnp.float32)
    for ki in range(1, k):
        vacc = vacc + coeffs[ki] * rows[ki:ki + span:stride].astype(jnp.float32)

    # ---- fused reflect pad along W (p edge columns each side) ----------------
    if p > 0:
        left = [vacc[:, c:c + 1, :] for c in range(p, 0, -1)]            # cols p..1
        right = [vacc[:, c:c + 1, :] for c in range(w - 2, w - 2 - p, -1)]  # cols w-2..w-1-p
        wpad = jnp.concatenate(left + [vacc] + right, axis=1)            # (th_out, W+2p, CT)
    else:
        wpad = vacc

    # ---- horizontal (W) pass: de-interleave by stride once, then every tap is
    #      a contiguous sublane slice ------------------------------------------
    if stride > 1:
        dec = [wpad[:, r::stride, :] for r in range(stride)]
    else:
        dec = [wpad]
    hacc = coeffs[0] * dec[0][:, :w_out, :]
    for kj in range(1, k):
        r, q = kj % stride, kj // stride
        hacc = hacc + coeffs[kj] * dec[r][:, q:q + w_out, :]

    o_ref[0] = hacc.astype(o_ref.dtype)


def _step_vmem_bytes(th_out, c_tile, *, stride, k, p, w, w_out, a_rows, itemsize):
    """Estimate per-grid-step VMEM (double-buffered IO blocks + in-kernel temps)."""
    sub = _sublane(itemsize)
    lanes = _round_up(c_tile, 128)
    th_in = th_out * stride
    L = (th_out - 1) * stride + k
    w_r = _round_up(w, sub)
    w_pad_r = _round_up(w + 2 * p, 8)
    w_out_r = _round_up(w_out, sub)
    in_blk = th_in * w_r * lanes * itemsize
    aux_blk = max(a_rows, 1) * w_r * lanes * itemsize
    out_blk = th_out * w_out_r * lanes * itemsize
    io = 2 * (in_blk + aux_blk + out_blk)            # pipeline double-buffering
    tmp = L * w_r * lanes * itemsize                 # assembled rows (input dtype)
    tmp += 3 * th_out * w_pad_r * lanes * 4          # f32 vacc / wpad / hacc temps
    return io + tmp


def _pick_tiles(c, h, w, h_out, w_out, k, stride, p, itemsize, cap):
    """Pick (th_out, c_tile, (pre, main, post) row counts) that fit the budget."""
    budget = (cap * 7) // 10
    overflow = max(0, h_out * stride - h)

    if c <= 128:
        c_cands = [c]                                   # lane dim == full C is legal
    else:
        max_mult = min(4, (c + 127) // 128)             # up to 512 lanes
        c_cands = [128 * m for m in range(max_mult, 0, -1)]

    def row_split(th_out):
        t = h_out // th_out
        th_in = th_out * stride
        L = (th_out - 1) * stride + k
        use_main = max(th_in - max(0, t * th_in - h), 0)
        pre = min(p, L)
        main = min(use_main, L - pre)
        post = L - pre - main
        return pre, main, post

    divisors = sorted(d for d in range(1, h_out + 1)
                      if h_out % d == 0 and d * stride > overflow)
    assert divisors, "no legal H tile (degenerate stride/kernel combination)"

    def fits(d, ct):
        pre, main, post = row_split(d)
        sb = _step_vmem_bytes(d, ct, stride=stride, k=k, p=p, w=w, w_out=w_out,
                              a_rows=pre + post, itemsize=itemsize)
        return sb <= budget

    # Prefer <=32-row output tiles: enough grid steps for pipelining / both v7x
    # cores, while big enough to amortize the ~0.35us/step grid overhead.
    for ct in c_cands:
        for d in sorted([d for d in divisors if d <= 32], reverse=True):
            if fits(d, ct):
                return d, ct, row_split(d)
    # Otherwise anything that fits, smallest channel tile / smallest row tile first.
    for ct in reversed(c_cands):
        for d in divisors:
            if fits(d, ct):
                return d, ct, row_split(d)
    # Last resort: smallest tiles even if over budget (still correct).
    d = divisors[0]
    return d, c_cands[-1], row_split(d)


def blurpool2d_nhwc(x, in_channels: int, kernel_size: int = 3, stride: int = 1):
    """BlurPool2d forward on an NHWC tensor (preferred, no relayout copies)."""
    n, h, w, c = x.shape
    assert c == in_channels
    k, s = kernel_size, stride
    p = conv_padding(k, s, dilation=1)
    assert h > p and w > p, "reflect padding requires spatial dims > padding"

    h_out = (h + 2 * p - k) // s + 1
    w_out = (w + 2 * p - k) // s + 1
    assert h_out >= 1 and w_out >= 1

    # Binomial coefficients (0.5 + 0.5x)^(k-1), exactly as the module buffer.
    coeffs = (np.poly1d((0.5, 0.5)) ** (k - 1)).coeffs.astype(np.float32)

    itemsize = x.dtype.itemsize
    cap = _vmem_capacity_bytes()
    th_out, c_tile, (pre_cnt, main_cnt, post_cnt) = _pick_tiles(
        c, h, w, h_out, w_out, k, s, p, itemsize, cap)
    th_in = th_out * s
    n_tiles = h_out // th_out

    # ---- halo / reflect rows: a tiny wrapper-side gather (static indices) ----
    # Assembled padded row t of tile hi maps to original row hi*th_in + t - p;
    # the reflect() below is the identity for interior rows, so one gather
    # covers top reflection, bottom reflection and the forward halo uniformly.
    tile_base = np.arange(n_tiles, dtype=np.int64)[:, None] * th_in
    pre_idx = (tile_base + (np.arange(pre_cnt, dtype=np.int64) - p)[None, :]
               if pre_cnt else np.zeros((n_tiles, 0), np.int64))
    post_idx = (tile_base + ((pre_cnt - p) + main_cnt
                             + np.arange(post_cnt, dtype=np.int64))[None, :]
                if post_cnt else np.zeros((n_tiles, 0), np.int64))
    idx = np.concatenate([pre_idx, post_idx], axis=1)
    if idx.shape[1] == 0:
        idx = np.zeros((n_tiles, 1), np.int64)          # dummy row, never read
    idx = np.abs(idx)
    idx = np.where(idx > h - 1, 2 * (h - 1) - idx, idx)
    assert (idx >= 0).all() and (idx < h).all()
    x_aux = x[:, idx.astype(np.int32)]                   # (N, T, A, W, C)
    a_dim = x_aux.shape[2]

    step_bytes = _step_vmem_bytes(th_out, c_tile, stride=s, k=k, p=p, w=w,
                                  w_out=w_out, a_rows=a_dim, itemsize=itemsize)
    vmem_limit = int(max(32 << 20, min(step_bytes * 5 // 4 + (4 << 20), cap)))

    kernel_fn = functools.partial(
        _blurpool_kernel,
        coeffs=tuple(float(v) for v in coeffs), stride=s, p=p,
        pre_cnt=pre_cnt, main_cnt=main_cnt, post_cnt=post_cnt,
        th_out=th_out, w=w, w_out=w_out)

    grid = (n, n_tiles, pl.cdiv(c, c_tile))

    out = pl.pallas_call(
        kernel_fn,
        out_shape=jax.ShapeDtypeStruct((n, h_out, w_out, c), x.dtype),
        grid_spec=pltpu.PrefetchScalarGridSpec(
            num_scalar_prefetch=0,
            grid=grid,
            in_specs=[
                pl.BlockSpec((1, th_in, w, c_tile),
                             lambda ni, hi, ci: (ni, hi, 0, ci)),
                pl.BlockSpec((1, 1, a_dim, w, c_tile),
                             lambda ni, hi, ci: (ni, hi, 0, 0, ci)),
            ],
            out_specs=pl.BlockSpec((1, th_out, w_out, c_tile),
                                   lambda ni, hi, ci: (ni, hi, 0, ci)),
        ),
        compiler_params=pltpu.CompilerParams(
            dimension_semantics=("parallel", "parallel", "parallel"),
            vmem_limit_bytes=vmem_limit,
        ),
    )(x, x_aux)
    return out


def blurpool2d(x, in_channels: int, kernel_size: int = 3, stride: int = 1):
    """BlurPool2d.forward for NCHW inputs (matches the PyTorch module)."""
    # TODO(synk): these two relayout copies cost more HBM traffic than the blur;
    # prefer blurpool2d_nhwc when the surrounding model is channels-last.
    x_nhwc = jnp.transpose(x, (0, 2, 3, 1))
    y = blurpool2d_nhwc(x_nhwc, in_channels, kernel_size, stride)
    return jnp.transpose(y, (0, 3, 1, 2))


def _reference(x, in_channels, kernel_size=3, stride=1):
    """Independent reference via lax.conv (mirrors the PyTorch forward)."""
    p = conv_padding(kernel_size, stride, dilation=1)
    xpad = jnp.pad(x, ((0, 0), (0, 0), (p, p), (p, p)), mode="reflect")
    coeffs = jnp.asarray(
        (np.poly1d((0.5, 0.5)) ** (kernel_size - 1)).coeffs.astype(np.float32))
    k2d = coeffs[:, None] * coeffs[None, :]
    kfull = jnp.broadcast_to(
        k2d[None, None], (in_channels, 1, kernel_size, kernel_size)).astype(x.dtype)
    return lax.conv_general_dilated(
        xpad, kfull,
        window_strides=(stride, stride),
        padding="VALID",
        dimension_numbers=("NCHW", "OIHW", "NCHW"),
        feature_group_count=in_channels)


if __name__ == "__main__":
    key = jax.random.PRNGKey(0)
    configs = [
        ((2, 4, 16, 16), 3, 1),
        ((2, 4, 16, 16), 3, 2),
        ((2, 4, 16, 16), 5, 2),
        ((2, 4, 15, 17), 3, 2),   # odd spatial dims: exercises bottom-reflect path
    ]
    for shape, ks, st in configs:
        key, sub = jax.random.split(key)
        x = jax.random.normal(sub, shape, dtype=jnp.float32)
        out = jax.block_until_ready(
            blurpool2d(x, in_channels=shape[1], kernel_size=ks, stride=st))
        ref = jax.block_until_ready(
            _reference(x, in_channels=shape[1], kernel_size=ks, stride=st))
        assert out.shape == ref.shape, (shape, ks, st, out.shape, ref.shape)
        np.testing.assert_allclose(
            np.asarray(out), np.asarray(ref), rtol=1e-5, atol=1e-5,
            err_msg=f"shape={shape} kernel_size={ks} stride={st}")
    print("KERNEL_OK")
</pallas_src>

<mosaic_0001>
module attributes {stable_mosaic.version = 11 : i64} {
  func.func @_blurpool_kernel(%arg0: i32, %arg1: i32, %arg2: i32, %arg3: memref<1x16x16x4xf32, #tpu.memory_space<vmem>>, %arg4: memref<1x1x2x16x4xf32, #tpu.memory_space<vmem>>, %arg5: memref<1x16x16x4xf32, #tpu.memory_space<vmem>>) attributes {dimension_semantics = [#tpu.dimension_semantics<parallel>, #tpu.dimension_semantics<parallel>, #tpu.dimension_semantics<parallel>], iteration_bounds = array<i64: 2, 1, 1>, scalar_prefetch = 0 : i64, scratch_operands = 0 : i64, tpu.core_type = #tpu.core_type<tc>, window_params = [{transform_indices = @transform_0, window_bounds = array<i64: 1, 16, 16, 4>}, {transform_indices = @transform_1, window_bounds = array<i64: 1, 1, 2, 16, 4>}, {transform_indices = @transform_2, window_bounds = array<i64: 1, 16, 16, 4>}]} {
    %c0 = arith.constant 0 : index
    %c0_0 = arith.constant 0 : index
    %c0_1 = arith.constant 0 : index
    %c0_2 = arith.constant 0 : index
    %c0_3 = arith.constant 0 : index
    %0 = vector.load %arg4[%c0, %c0_0, %c0_1, %c0_2, %c0_3] : memref<1x1x2x16x4xf32, #tpu.memory_space<vmem>>, vector<1x1x2x16x4xf32>
    %1 = vector.shape_cast %0 : vector<1x1x2x16x4xf32> to vector<2x16x4xf32>
    %2 = vector.extract_strided_slice %1 {offsets = [0, 0, 0], sizes = [1, 16, 4], strides = [1, 1, 1]} : vector<2x16x4xf32> to vector<1x16x4xf32>
    %c0_4 = arith.constant 0 : index
    %c0_5 = arith.constant 0 : index
    %c0_6 = arith.constant 0 : index
    %c0_7 = arith.constant 0 : index
    %3 = vector.load %arg3[%c0_4, %c0_5, %c0_6, %c0_7] : memref<1x16x16x4xf32, #tpu.memory_space<vmem>>, vector<1x16x16x4xf32>
    %4 = vector.shape_cast %3 : vector<1x16x16x4xf32> to vector<16x16x4xf32>
    %5 = vector.extract_strided_slice %1 {offsets = [1, 0, 0], sizes = [1, 16, 4], strides = [1, 1, 1]} : vector<2x16x4xf32> to vector<1x16x4xf32>
    %6 = tpu.concatenate %2, %4, %5 in 0 : vector<1x16x4xf32>, vector<16x16x4xf32>, vector<1x16x4xf32> -> vector<18x16x4xf32>
    %7 = vector.extract_strided_slice %6 {offsets = [0, 0, 0], sizes = [16, 16, 4], strides = [1, 1, 1]} : vector<18x16x4xf32> to vector<16x16x4xf32>
    %cst = arith.constant 2.500000e-01 : f32
    %8 = vector.broadcast %cst : f32 to vector<16x16x4xf32>
    %9 = arith.mulf %8, %7 : vector<16x16x4xf32>
    %10 = vector.extract_strided_slice %6 {offsets = [1, 0, 0], sizes = [16, 16, 4], strides = [1, 1, 1]} : vector<18x16x4xf32> to vector<16x16x4xf32>
    %cst_8 = arith.constant 5.000000e-01 : f32
    %11 = vector.broadcast %cst_8 : f32 to vector<16x16x4xf32>
    %12 = arith.mulf %11, %10 : vector<16x16x4xf32>
    %13 = arith.addf %9, %12 : vector<16x16x4xf32>
    %14 = vector.extract_strided_slice %6 {offsets = [2, 0, 0], sizes = [16, 16, 4], strides = [1, 1, 1]} : vector<18x16x4xf32> to vector<16x16x4xf32>
    %cst_9 = arith.constant 2.500000e-01 : f32
    %15 = vector.broadcast %cst_9 : f32 to vector<16x16x4xf32>
    %16 = arith.mulf %15, %14 : vector<16x16x4xf32>
    %17 = arith.addf %13, %16 : vector<16x16x4xf32>
    %18 = vector.extract_strided_slice %17 {offsets = [0, 1, 0], sizes = [16, 1, 4], strides = [1, 1, 1]} : vector<16x16x4xf32> to vector<16x1x4xf32>
    %19 = vector.extract_strided_slice %17 {offsets = [0, 14, 0], sizes = [16, 1, 4], strides = [1, 1, 1]} : vector<16x16x4xf32> to vector<16x1x4xf32>
    %20 = tpu.concatenate %18, %17, %19 in 1 : vector<16x1x4xf32>, vector<16x16x4xf32>, vector<16x1x4xf32> -> vector<16x18x4xf32>
    %21 = vector.extract_strided_slice %20 {offsets = [0, 0, 0], sizes = [16, 16, 4], strides = [1, 1, 1]} : vector<16x18x4xf32> to vector<16x16x4xf32>
    %cst_10 = arith.constant 2.500000e-01 : f32
    %22 = vector.broadcast %cst_10 : f32 to vector<16x16x4xf32>
    %23 = arith.mulf %22, %21 : vector<16x16x4xf32>
    %24 = vector.extract_strided_slice %20 {offsets = [0, 1, 0], sizes = [16, 16, 4], strides = [1, 1, 1]} : vector<16x18x4xf32> to vector<16x16x4xf32>
    %cst_11 = arith.constant 5.000000e-01 : f32
    %25 = vector.broadcast %cst_11 : f32 to vector<16x16x4xf32>
    %26 = arith.mulf %25, %24 : vector<16x16x4xf32>
    %27 = arith.addf %23, %26 : vector<16x16x4xf32>
    %28 = vector.extract_strided_slice %20 {offsets = [0, 2, 0], sizes = [16, 16, 4], strides = [1, 1, 1]} : vector<16x18x4xf32> to vector<16x16x4xf32>
    %cst_12 = arith.constant 2.500000e-01 : f32
    %29 = vector.broadcast %cst_12 : f32 to vector<16x16x4xf32>
    %30 = arith.mulf %29, %28 : vector<16x16x4xf32>
    %31 = arith.addf %27, %30 : vector<16x16x4xf32>
    %c0_13 = arith.constant 0 : index
    %c0_14 = arith.constant 0 : index
    %c0_15 = arith.constant 0 : index
    %c0_16 = arith.constant 0 : index
    %32 = vector.load %arg5[%c0_13, %c0_14, %c0_15, %c0_16] : memref<1x16x16x4xf32, #tpu.memory_space<vmem>>, vector<1x16x16x4xf32>
    %33 = vector.shape_cast %32 : vector<1x16x16x4xf32> to vector<16x16x4xf32>
    %34 = vector.shape_cast %31 : vector<16x16x4xf32> to vector<1x16x16x4xf32>
    tpu.vector_store %arg5[%c0_13, %c0_14, %c0_15, %c0_16], %34 {strides = array<i32>} : memref<1x16x16x4xf32, #tpu.memory_space<vmem>>, vector<1x16x16x4xf32>,
    return
  }
  func.func @transform_0(%arg0: i32, %arg1: i32, %arg2: i32) -> (i32, i32, i32, i32) {
    %c0_i32 = arith.constant 0 : i32
    %c0_i32_0 = arith.constant 0 : i32
    return %arg0, %arg1, %c0_i32, %arg2 : i32, i32, i32, i32
  }
  func.func @transform_1(%arg0: i32, %arg1: i32, %arg2: i32) -> (i32, i32, i32, i32, i32) {
    %c0_i32 = arith.constant 0 : i32
    %c0_i32_0 = arith.constant 0 : i32
    %c0_i32_1 = arith.constant 0 : i32
    return %arg0, %arg1, %c0_i32, %c0_i32_0, %arg2 : i32, i32, i32, i32, i32
  }
  func.func @transform_2(%arg0: i32, %arg1: i32, %arg2: i32) -> (i32, i32, i32, i32) {
    %c0_i32 = arith.constant 0 : i32
    %c0_i32_0 = arith.constant 0 : i32
    return %arg0, %arg1, %c0_i32, %arg2 : i32, i32, i32, i32
  }
}

</mosaic_0001>

<bundles_post_ra>
// kernel: tpu_custom_call.1
= control target key start
LH: loop header
LB: loop body
LE: loop exit
PB: predicated region body
PF: predicated region fallthrough
CT: control target
= control target key end

     0   :  { %s1382_s9 = smov 0   ;;  %s1384_s10 = smov 0   ;;  %s1828_s0 = inlined_call_operand.vmem [shape: f32[2,16,16,4], index: 0, kind: input, shape index: {}]   ;;  %s1829_s1 = inlined_call_operand.vmem [shape: f32[2,1,2,16,4], index: 1, kind: input, shape index: {}]   ;;  %s1830_s2 = inlined_call_operand.vmem [shape: f32[2,16,16,4], index: 2, kind: output, shape index: {}]  }
   0x1   :  { %s1386_s11 = smov 0  }
   0x2 LB: > { %s31_s12 = sadd.s32 1, %s1361_s10  ;;  %p1307_p0 = scmp.ge.s32.totalorder %s1365_s11, 1  ;;  %s1365_s11 = sphi %s1386_s11, %s12_s11   ;;  %s1361_s10 = sphi %s1384_s10, %s1832_s10   ;;  %s1357_s9 = sphi %s1382_s9, %s1831_s9  }
   0x3   : > { %p33_p1 = scmp.ge.s32.totalorder %s31_s12, 2  ;;  %p169_p2 = scmp.lt.s32.totalorder %s1365_s11, 3 }
   0x5   : > { %s1834_s12 = smov (%p33_p1, %s31_s12), 0  ;;  %p170_p3 = pnand %p1307_p0, %p169_p2 }
   0x6   : > { %p220_p4 = scmp.lt.s32.totalorder (!%p170_p3), %s1357_s9, 1 }
   0x7   : > { %173 = sbr.rel (%p170_p3) target bundleno = 167 (0xa7), region = 28 }
   0xc   : > { %s1836_s9 = smov (!%p220_p4, %s1357_s9), 1  ;;  %vm491_vm0 = vcmask 1040384   ;;  %vm780_vm1 = vcmask 1046528   ;;  %vm989_vm2 = vcmask 1045504   ;;  %vm1134_vm3 = vcmask 31744  }
   0xd   : > { %s1316_s13 = sshll.u32 %s1836_s9, 8  ;;  %s1317_s14 = sshll.u32 %s1836_s9, 5 }
   0xe   : > { %s1409_s17 = scalar_lea.vmem %s1828_s0, %s1316_s13  ;;  %s1414_s20 = scalar_lea.vmem %s1829_s1, %s1317_s14 }
   0xf   : > { %v259_v0 = vld [vmem:[%s1414_s20] sm:$0xff]  ;;  %v260_v1 = vld [vmem:[%s1414_s20 + $0x8] sm:$0xff]  ;;  %v265_v4 = vld [vmem:[%s1409_s17 + $0x10] sm:$0xff]  ;;  %s1472_s23 = scalar_lea.vmem %s1830_s2, %s1316_s13 }
  0x10   : > { %v263_v2 = vld [vmem:[%s1409_s17] sm:$0xff]  ;;  %v264_v3 = vld [vmem:[%s1409_s17 + $0x8] sm:$0xff]  ;;  %v266_v5 = vld [vmem:[%s1409_s17 + $0x18] sm:$0xff]  ;;  %v295_v6 = vmul.f32 0.25, %v259_v0  ;;  %v296_v7 = vmul.f32 0.25, %v260_v1  ;;  %v299_v9 = vmul.f32 0.25, %v265_v4 }
  0x11   : > { %v327_v8 = vmul.f32 0.5, %v263_v2  ;;  %v300_v10 = vmul.f32 0.25, %v266_v5  ;;  %v328_v11 = vmul.f32 0.5, %v264_v3  ;;  %v267_v12 = vld [vmem:[%s1409_s17 + $0x20] sm:$0xff]  ;;  %v268_v13 = vld [vmem:[%s1409_s17 + $0x28] sm:$0xff]  ;;  %v297_v14 = vmul.f32 0.25, %v263_v2 }
  0x12   : > { %v298_v16 = vmul.f32 0.25, %v264_v3  ;;  %v1424_v17 = vmul.f32 0.25, %v267_v12  ;;  %v1426_v18 = vmul.f32 0.25, %v268_v13  ;;  %v1429_v19 = vld [vmem:[%s1409_s17 + $0x30] sm:$0xff]  ;;  %v1432_v20 = vld [vmem:[%s1409_s17 + $0x38] sm:$0xff]  ;;  %v1435_v21 = vld [vmem:[%s1409_s17 + $0x40] sm:$0xff] }
  0x13   : > { %v359_v15 = vadd.f32 %v327_v8, %v295_v6  ;;  %v360_v22 = vadd.f32 %v328_v11, %v296_v7  ;;  %v329_v23 = vmul.f32 0.5, %v265_v4  ;;  %v330_v24 = vmul.f32 0.5, %v266_v5  ;;  %v1444_v33 = vld [vmem:[%s1409_s17 + $0x48] sm:$0xff] }
  0x14   : > { %v1438_v25 = vmul.f32 0.25, %v1429_v19  ;;  %v1441_v27 = vmul.f32 0.25, %v1432_v20  ;;  %v331_v28 = vmul.f32 0.5, %v267_v12  ;;  %v332_v29 = vmul.f32 0.5, %v268_v13 }
  0x15   : > { %v395_v26 = vadd.f32 %v359_v15, %v299_v9  ;;  %v396_v30 = vadd.f32 %v360_v22, %v300_v10  ;;  %v361_v31 = vadd.f32 %v329_v23, %v297_v14  ;;  %v362_v32 = vadd.f32 %v330_v24, %v298_v16 }
  0x16   : > { %v1447_v34 = vmul.f32 0.25, %v1435_v21  ;;  %v363_v37 = vadd.f32 %v331_v28, %v299_v9  ;;  %v364_v38 = vadd.f32 %v332_v29, %v300_v10  ;;  %v1457_v46 = vmul.f32 0.25, %v1444_v33 }
  0x17   : > { %v443_v35 = vrot.slane %v395_v26, 1  ;;  %v492_v36 = vrot.slane %v395_v26, 7  ;;  %v493_v39 = vrot.slane %v396_v30, 7  ;;  %v588_v40 = vrot.slane %v396_v30, 5 }
  0x18   : > { %v397_v41 = vadd.f32 %v361_v31, %v1424_v17  ;;  %v398_v42 = vadd.f32 %v362_v32, %v1426_v18  ;;  %v399_v44 = vadd.f32 %v363_v37, %v1438_v25  ;;  %v1454_v45 = vadd.f32 %v364_v38, %v1441_v27 }
  0x19   : > { %v620_v43 = vsel %vm491_vm0, %v443_v35, %v492_v36  ;;  %v494_v47 = vsel %vm491_vm0, %v492_v36, %v493_v39  ;;  %v636_v50 = vsel %vm491_vm0, %v493_v39, %v588_v40  ;;  %v333_v39 = vmul.f32 0.5, %v1429_v19 }
  0x1a   : > { %v652_v48 = vmul.f32 0.25, %v620_v43  ;;  %v684_v49 = vmul.f32 0.5, %v620_v43  ;;  %v653_v51 = vmul.f32 0.25, %v494_v47  ;;  %v685_v52 = vmul.f32 0.5, %v494_v47 }
  0x1b   : > { %v686_v53 = vmul.f32 0.5, %v636_v50  ;;  %v925_v54 = vmul.f32 0.25, %v636_v50  ;;  %v444_v57 = vrot.slane %v397_v41, 1  ;;  %v495_v58 = vrot.slane %v397_v41, 7 }
  0x1c   : > { %v781_v55 = vrot.slane %v684_v49, 1  ;;  %v990_v56 = vrot.slane %v652_v48, 2  ;;  %v782_v59 = vrot.slane %v685_v52, 1  ;;  %v991_v60 = vrot.slane %v653_v51, 2  ;;  %v273_v52 = vld [vmem:[%s1409_s17 + $0x50] sm:$0xff] }
  0x1d   : > { %v784_v61 = vrot.slane %v686_v53, 1  ;;  %v993_v62 = vrot.slane %v925_v54, 2  ;;  %v496_v63 = vrot.slane %v398_v42, 7  ;;  %v621_v0 = vsel %vm491_vm0, %v444_v57, %v495_v58  ;;  %v1491_v57 = vld [vmem:[%s1409_s17 + $0x58] sm:$0xff] }
  0x1e   : > { %v589_v1 = vrot.slane %v398_v42, 5  ;;  %v445_v2 = vrot.slane %v399_v44, 1  ;;  %v783_v3 = vsel %vm780_vm1, %v781_v55, %v782_v59  ;;  %v992_v4 = vsel %vm989_vm2, %v990_v56, %v991_v60 }
  0x1f   : > { %v785_v5 = vsel %vm780_vm1, %v782_v59, %v784_v61  ;;  %v994_v6 = vsel %vm989_vm2, %v991_v60, %v993_v62  ;;  %v893_v7 = vadd.f32 %v783_v3, %v652_v48  ;;  %v497_v9 = vsel %vm491_vm0, %v495_v58, %v496_v63 }
  0x20   : > { %v894_v8 = vadd.f32 %v785_v5, %v653_v51  ;;  %v654_v10 = vmul.f32 0.25, %v621_v0  ;;  %v655_v11 = vmul.f32 0.25, %v497_v9  ;;  %v687_v12 = vmul.f32 0.5, %v621_v0 }
  0x21   : > { %v688_v13 = vmul.f32 0.5, %v497_v9  ;;  %v637_v14 = vsel %vm491_vm0, %v496_v63, %v589_v1  ;;  %v1102_v15 = vadd.f32 %v992_v4, %v893_v7  ;;  %v498_v31 = vrot.slane %v399_v44, 7 }
  0x22   : > { %v1103_v16 = vadd.f32 %v994_v6, %v894_v8  ;;  %v995_v22 = vrot.slane %v654_v10, 2  ;;  %v689_v23 = vmul.f32 0.5, %v637_v14  ;;  %v786_v24 = vrot.slane %v687_v12, 1  ;;  %v1517_v12 = vld [vmem:[%s1409_s17 + $0x68] sm:$0xff] }
  0x23   : > { %v787_v26 = vrot.slane %v688_v13, 1  ;;  %v996_v28 = vrot.slane %v655_v11, 2  ;;  %v926_v29 = vmul.f32 0.25, %v637_v14  ;;  %1135 = vst.msk [vmem:[%s1472_s23] sm:$0xff] %vm1134_vm3, %v1102_v15  ;;  %v499_v32 = vrot.slane %v1454_v45, 7 }
  0x24   : > { %1136 = vst.msk [vmem:[%s1472_s23 + $0x8] sm:$0xff] %vm1134_vm3, %v1103_v16  ;;  %v789_v30 = vrot.slane %v689_v23, 1  ;;  %v590_v35 = vrot.slane %v1454_v45, 5  ;;  %v622_v43 = vsel %vm491_vm0, %v445_v2, %v498_v31  ;;  %v334_v61 = vmul.f32 0.5, %v1432_v20 }
  0x25   : > { %v788_v36 = vsel %vm780_vm1, %v786_v24, %v787_v26  ;;  %v997_v37 = vsel %vm989_vm2, %v995_v22, %v996_v28  ;;  %v998_v38 = vrot.slane %v926_v29, 2  ;;  %v500_v42 = vsel %vm491_vm0, %v498_v31, %v499_v32 }
  0x26   : > { %v895_v40 = vadd.f32 %v788_v36, %v654_v10  ;;  %v790_v41 = vsel %vm780_vm1, %v787_v26, %v789_v30  ;;  %v656_v47 = vmul.f32 0.25, %v622_v43  ;;  %v657_v48 = vmul.f32 0.25, %v500_v42 }
  0x27   : > { %v896_v44 = vadd.f32 %v790_v41, %v655_v11  ;;  %v999_v45 = vsel %vm989_vm2, %v996_v28, %v998_v38  ;;  %v690_v50 = vmul.f32 0.5, %v622_v43  ;;  %v691_v51 = vmul.f32 0.5, %v500_v42 }
  0x28   : > { %v1104_v49 = vadd.f32 %v997_v37, %v895_v40  ;;  %v638_v19 = vsel %vm491_vm0, %v499_v32, %v590_v35  ;;  %v1000_v54 = vrot.slane %v656_v47, 2  ;;  %v1001_v55 = vrot.slane %v657_v48, 2 }
  0x29   : > { %v1105_v53 = vadd.f32 %v999_v45, %v896_v44  ;;  %v692_v56 = vmul.f32 0.5, %v638_v19  ;;  %v791_v58 = vrot.slane %v690_v50, 1  ;;  %v792_v59 = vrot.slane %v691_v51, 1 }
  0x2a   : > { %1137 = vst.msk [vmem:[%s1472_s23 + $0x10] sm:$0xff] %vm1134_vm3, %v1104_v49  ;;  %v927_v60 = vmul.f32 0.25, %v638_v19  ;;  %v1002_v62 = vsel %vm989_vm2, %v1000_v54, %v1001_v55  ;;  %v365_v0 = vadd.f32 %v333_v39, %v1424_v17  ;;  %v1500_v1 = vmul.f32 0.25, %v273_v52 }
  0x2b   : > { %1138 = vst.msk [vmem:[%s1472_s23 + $0x18] sm:$0xff] %vm1134_vm3, %v1105_v53  ;;  %v794_v63 = vrot.slane %v692_v56, 1  ;;  %v793_v2 = vsel %vm780_vm1, %v791_v58, %v792_v59  ;;  %v366_v4 = vadd.f32 %v334_v61, %v1426_v18  ;;  %v1505_v5 = vmul.f32 0.25, %v1491_v57  ;;  %v1514_v18 = vld [vmem:[%s1409_s17 + $0x60] sm:$0xff] }
  0x2c   : > { %v1003_v3 = vrot.slane %v927_v60, 2  ;;  %v897_v20 = vadd.f32 %v793_v2, %v656_v47  ;;  %v401_v7 = vadd.f32 %v365_v0, %v1447_v34  ;;  %v335_v8 = vmul.f32 0.5, %v1435_v21 }
  0x2d   : > { %v795_v6 = vsel %vm780_vm1, %v792_v59, %v794_v63  ;;  %v402_v10 = vadd.f32 %v366_v4, %v1457_v46  ;;  %v336_v11 = vmul.f32 0.5, %v1444_v33  ;;  %v1526_v28 = vmul.f32 0.25, %v1514_v18  ;;  %v277_v4 = vld [vmem:[%s1409_s17 + $0x70] sm:$0xff] }
  0x2e   : > { %v898_v9 = vadd.f32 %v795_v6, %v657_v48  ;;  %v1004_v17 = vsel %vm989_vm2, %v1001_v55, %v1003_v3  ;;  %v1106_v13 = vadd.f32 %v1002_v62, %v897_v20  ;;  %v446_v14 = vrot.slane %v401_v7, 1  ;;  %v1546_v20 = vld [vmem:[%s1409_s17 + $0x78] sm:$0xff] }
  0x2f   : > { %v501_v15 = vrot.slane %v401_v7, 7  ;;  %v367_v16 = vadd.f32 %v335_v8, %v1438_v25  ;;  %v502_v23 = vrot.slane %v402_v10, 7  ;;  %v591_v21 = vrot.slane %v402_v10, 5 }
  0x30   : > { %v1107_v22 = vadd.f32 %v1004_v17, %v898_v9  ;;  %v368_v24 = vadd.f32 %v336_v11, %v1441_v27  ;;  %1139 = vst.msk [vmem:[%s1472_s23 + $0x20] sm:$0xff] %vm1134_vm3, %v1106_v13  ;;  %v1529_v29 = vmul.f32 0.25, %v1517_v12  ;;  %v337_v50 = vmul.f32 0.5, %v273_v52 }
  0x31   : > { %v623_v26 = vsel %vm491_vm0, %v446_v14, %v501_v15  ;;  %v403_v33 = vadd.f32 %v367_v16, %v1500_v1  ;;  %v503_v25 = vsel %vm491_vm0, %v501_v15, %v502_v23  ;;  %v639_v27 = vsel %vm491_vm0, %v502_v23, %v591_v21  ;;  %v1555_v14 = vld [vmem:[%s1409_s17 + $0x80] sm:$0xff] }
  0x32   : > { %1140 = vst.msk [vmem:[%s1472_s23 + $0x28] sm:$0xff] %vm1134_vm3, %v1107_v22  ;;  %v658_v30 = vmul.f32 0.25, %v623_v26  ;;  %v693_v31 = vmul.f32 0.5, %v623_v26  ;;  %v659_v32 = vmul.f32 0.25, %v503_v25  ;;  %v694_v35 = vmul.f32 0.5, %v503_v25  ;;  %v1569_v25 = vld [vmem:[%s1409_s17 + $0x88] sm:$0xff] }
  0x33   : > { %v695_v36 = vmul.f32 0.5, %v639_v27  ;;  %v928_v37 = vmul.f32 0.25, %v639_v27  ;;  %v404_v40 = vadd.f32 %v368_v24, %v1505_v5  ;;  %v447_v41 = vrot.slane %v403_v33, 1 }
  0x34   : > { %v796_v38 = vrot.slane %v693_v31, 1  ;;  %v1005_v39 = vrot.slane %v658_v30, 2  ;;  %v797_v42 = vrot.slane %v694_v35, 1  ;;  %v1006_v43 = vrot.slane %v659_v32, 2 }
  0x35   : > { %v799_v44 = vrot.slane %v695_v36, 1  ;;  %v1008_v45 = vrot.slane %v928_v37, 2  ;;  %v504_v47 = vrot.slane %v403_v33, 7  ;;  %v505_v48 = vrot.slane %v404_v40, 7 }
  0x36   : > { %v592_v49 = vrot.slane %v404_v40, 5  ;;  %v798_v51 = vsel %vm780_vm1, %v796_v38, %v797_v42  ;;  %v1007_v19 = vsel %vm989_vm2, %v1005_v39, %v1006_v43  ;;  %v338_v3 = vmul.f32 0.5, %v1491_v57 }
  0x37   : > { %v800_v53 = vsel %vm780_vm1, %v797_v42, %v799_v44  ;;  %v1009_v54 = vsel %vm989_vm2, %v1006_v43, %v1008_v45  ;;  %v899_v55 = vadd.f32 %v798_v51, %v658_v30  ;;  %v506_v58 = vsel %vm491_vm0, %v504_v47, %v505_v48 }
  0x38   : > { %v900_v56 = vadd.f32 %v800_v53, %v659_v32  ;;  %v624_v59 = vsel %vm491_vm0, %v447_v41, %v504_v47  ;;  %v661_v52 = vmul.f32 0.25, %v506_v58  ;;  %v697_v62 = vmul.f32 0.5, %v506_v58 }
  0x39   : > { %v660_v60 = vmul.f32 0.25, %v624_v59  ;;  %v696_v61 = vmul.f32 0.5, %v624_v59  ;;  %v1108_v63 = vadd.f32 %v1007_v19, %v899_v55  ;;  %v640_v2 = vsel %vm491_vm0, %v505_v48, %v592_v49 }
  0x3a   : > { %v1109_v0 = vadd.f32 %v1009_v54, %v900_v56  ;;  %v802_v7 = vrot.slane %v697_v62, 1  ;;  %v1011_v9 = vrot.slane %v661_v52, 2  ;;  %v698_v17 = vmul.f32 0.5, %v640_v2 }
  0x3b   : > { %v801_v6 = vrot.slane %v696_v61, 1  ;;  %v1010_v8 = vrot.slane %v660_v60, 2  ;;  %1141 = vst.msk [vmem:[%s1472_s23 + $0x30] sm:$0xff] %vm1134_vm3, %v1108_v63  ;;  %v929_v10 = vmul.f32 0.25, %v640_v2  ;;  %v369_v11 = vadd.f32 %v337_v50, %v1447_v34 }
  0x3c   : > { %1142 = vst.msk [vmem:[%s1472_s23 + $0x38] sm:$0xff] %vm1134_vm3, %v1109_v0  ;;  %v370_v13 = vadd.f32 %v338_v3, %v1457_v46  ;;  %v1559_v16 = vmul.f32 0.25, %v277_v4  ;;  %v1562_v22 = vmul.f32 0.25, %v1546_v20  ;;  %v804_v21 = vrot.slane %v698_v17, 1 }
  0x3d   : > { %v803_v57 = vsel %vm780_vm1, %v801_v6, %v802_v7  ;;  %v1012_v15 = vsel %vm989_vm2, %v1010_v8, %v1011_v9  ;;  %v1013_v24 = vrot.slane %v929_v10, 2  ;;  %v405_v26 = vadd.f32 %v369_v11, %v1526_v28 }
  0x3e   : > { %v901_v23 = vadd.f32 %v803_v57, %v660_v60  ;;  %v406_v34 = vadd.f32 %v370_v13, %v1529_v29  ;;  %v339_v46 = vmul.f32 0.5, %v1514_v18  ;;  %v340_v33 = vmul.f32 0.5, %v1517_v12 }
  0x3f   : > { %v1572_v30 = vmul.f32 0.25, %v1555_v14  ;;  %v805_v27 = vsel %vm780_vm1, %v802_v7, %v804_v21  ;;  %v1014_v32 = vsel %vm989_vm2, %v1011_v9, %v1013_v24  ;;  %v448_v35 = vrot.slane %v405_v26, 1 }
  0x40   : > { %v1110_v31 = vadd.f32 %v1012_v15, %v901_v23  ;;  %v902_v36 = vadd.f32 %v805_v27, %v661_v52  ;;  %v507_v37 = vrot.slane %v405_v26, 7  ;;  %v508_v38 = vrot.slane %v406_v34, 7  ;;  %v281_v15 = vld [vmem:[%s1409_s17 + $0x90] sm:$0xff]  ;;  %v1599_v23 = vld [vmem:[%s1409_s17 + $0x98] sm:$0xff] }
  0x41   : > { %v593_v39 = vrot.slane %v406_v34, 5  ;;  %v371_v18 = vadd.f32 %v339_v46, %v1500_v1  ;;  %v372_v12 = vadd.f32 %v340_v33, %v1505_v5  ;;  %v1581_v40 = vmul.f32 0.25, %v1569_v25 }
  0x42   : > { %1143 = vst.msk [vmem:[%s1472_s23 + $0x40] sm:$0xff] %vm1134_vm3, %v1110_v31  ;;  %v341_v41 = vmul.f32 0.5, %v277_v4  ;;  %v1111_v42 = vadd.f32 %v1014_v32, %v902_v36  ;;  %v509_v43 = vsel %vm491_vm0, %v507_v37, %v508_v38  ;;  %v625_v44 = vsel %vm491_vm0, %v448_v35, %v507_v37 }
  0x43   : > { %v641_v45 = vsel %vm491_vm0, %v508_v38, %v593_v39  ;;  %v662_v47 = vmul.f32 0.25, %v625_v44  ;;  %v663_v48 = vmul.f32 0.25, %v509_v43  ;;  %v699_v49 = vmul.f32 0.5, %v625_v44 }
  0x44   : > { %v700_v50 = vmul.f32 0.5, %v509_v43  ;;  %1144 = vst.msk [vmem:[%s1472_s23 + $0x48] sm:$0xff] %vm1134_vm3, %v1111_v42  ;;  %v701_v1 = vmul.f32 0.5, %v641_v45  ;;  %v930_v51 = vmul.f32 0.25, %v641_v45  ;;  %v407_v5 = vadd.f32 %v371_v18, %v1559_v16 }
  0x45   : > { %v408_v19 = vadd.f32 %v372_v12, %v1562_v22  ;;  %v806_v53 = vrot.slane %v699_v49, 1  ;;  %v1015_v55 = vrot.slane %v662_v47, 2  ;;  %v1016_v56 = vrot.slane %v663_v48, 2  ;;  %v1625_v49 = vld [vmem:[%s1409_s17 + $0xa8] sm:$0xff] }
  0x46   : > { %v807_v54 = vrot.slane %v700_v50, 1  ;;  %v809_v58 = vrot.slane %v701_v1, 1  ;;  %v1018_v59 = vrot.slane %v930_v51, 2  ;;  %v449_v60 = vrot.slane %v407_v5, 1 }
  0x47   : > { %v510_v52 = vrot.slane %v407_v5, 7  ;;  %v1017_v62 = vsel %vm989_vm2, %v1015_v55, %v1016_v56  ;;  %v511_v63 = vrot.slane %v408_v19, 7  ;;  %v594_v0 = vrot.slane %v408_v19, 5 }
  0x48   : > { %v808_v61 = vsel %vm780_vm1, %v806_v53, %v807_v54  ;;  %v810_v3 = vsel %vm780_vm1, %v807_v54, %v809_v58  ;;  %v1019_v4 = vsel %vm989_vm2, %v1016_v56, %v1018_v59  ;;  %v342_v27 = vmul.f32 0.5, %v1546_v20 }
  0x49   : > { %v903_v2 = vadd.f32 %v808_v61, %v662_v47  ;;  %v626_v6 = vsel %vm491_vm0, %v449_v60, %v510_v52  ;;  %v904_v7 = vadd.f32 %v810_v3, %v663_v48  ;;  %v512_v8 = vsel %vm491_vm0, %v510_v52, %v511_v63  ;;  %v1622_v48 = vld [vmem:[%s1409_s17 + $0xa0] sm:$0xff] }
  0x4a   : > { %v664_v9 = vmul.f32 0.25, %v626_v6  ;;  %v702_v17 = vmul.f32 0.5, %v626_v6  ;;  %v665_v11 = vmul.f32 0.25, %v512_v8  ;;  %v703_v13 = vmul.f32 0.5, %v512_v8 }
  0x4b   : > { %v1112_v10 = vadd.f32 %v1017_v62, %v903_v2  ;;  %v642_v57 = vsel %vm491_vm0, %v511_v63, %v594_v0  ;;  %v1113_v21 = vadd.f32 %v1019_v4, %v904_v7  ;;  %v373_v35 = vadd.f32 %v341_v41, %v1526_v28 }
  0x4c   : > { %v811_v24 = vrot.slane %v702_v17, 1  ;;  %v1020_v26 = vrot.slane %v664_v9, 2  ;;  %v704_v34 = vmul.f32 0.5, %v642_v57  ;;  %v812_v46 = vrot.slane %v703_v13, 1 }
  0x4d   : > { %1145 = vst.msk [vmem:[%s1472_s23 + $0x50] sm:$0xff] %vm1134_vm3, %v1112_v10  ;;  %v1021_v33 = vrot.slane %v665_v11, 2  ;;  %v931_v31 = vmul.f32 0.25, %v642_v57  ;;  %1146 = vst.msk [vmem:[%s1472_s23 + $0x58] sm:$0xff] %vm1134_vm3, %v1113_v21  ;;  %v1607_v36 = vmul.f32 0.25, %v281_v15  ;;  %v1610_v37 = vmul.f32 0.25, %v1599_v23 }
  0x4e   : > { %v814_v32 = vrot.slane %v704_v34, 1  ;;  %v813_v38 = vsel %vm780_vm1, %v811_v24, %v812_v46  ;;  %v374_v12 = vadd.f32 %v342_v27, %v1529_v29  ;;  %v409_v43 = vadd.f32 %v373_v35, %v1572_v30 }
  0x4f   : > { %v1022_v39 = vsel %vm989_vm2, %v1020_v26, %v1021_v33  ;;  %v1023_v18 = vrot.slane %v931_v31, 2  ;;  %v905_v20 = vadd.f32 %v813_v38, %v664_v9  ;;  %v343_v28 = vmul.f32 0.5, %v1555_v14 }
  0x50   : > { %v815_v42 = vsel %vm780_vm1, %v812_v46, %v814_v32  ;;  %v410_v45 = vadd.f32 %v374_v12, %v1581_v40  ;;  %v344_v47 = vmul.f32 0.5, %v1569_v25  ;;  %v450_v50 = vrot.slane %v409_v43, 1  ;;  %v285_v12 = vld [vmem:[%s1409_s17 + $0xb0] sm:$0xff] }
  0x51   : > { %v906_v41 = vadd.f32 %v815_v42, %v665_v11  ;;  %v1024_v44 = vsel %vm989_vm2, %v1021_v33, %v1023_v18  ;;  %v1114_v29 = vadd.f32 %v1022_v39, %v905_v20  ;;  %v513_v1 = vrot.slane %v409_v43, 7  ;;  %v1654_v20 = vld [vmem:[%s1409_s17 + $0xb8] sm:$0xff] }
  0x52   : > { %v375_v51 = vadd.f32 %v343_v28, %v1559_v16  ;;  %v514_v19 = vrot.slane %v410_v45, 7  ;;  %v595_v14 = vrot.slane %v410_v45, 5  ;;  %v376_v53 = vadd.f32 %v344_v47, %v1562_v22 }
  0x53   : > { %v1115_v5 = vadd.f32 %v1024_v44, %v906_v41  ;;  %1147 = vst.msk [vmem:[%s1472_s23 + $0x60] sm:$0xff] %vm1134_vm3, %v1114_v29  ;;  %v627_v54 = vsel %vm491_vm0, %v450_v50, %v513_v1  ;;  %v1634_v55 = vmul.f32 0.25, %v1622_v48  ;;  %v1637_v56 = vmul.f32 0.25, %v1625_v49  ;;  %v1663_v50 = vld [vmem:[%s1409_s17 + $0xc0] sm:$0xff] }
  0x54   : > { %v411_v25 = vadd.f32 %v375_v51, %v1607_v36  ;;  %v515_v16 = vsel %vm491_vm0, %v513_v1, %v514_v19  ;;  %v666_v58 = vmul.f32 0.25, %v627_v54  ;;  %v705_v59 = vmul.f32 0.5, %v627_v54 }
  0x55   : > { %1148 = vst.msk [vmem:[%s1472_s23 + $0x68] sm:$0xff] %vm1134_vm3, %v1115_v5  ;;  %v643_v22 = vsel %vm491_vm0, %v514_v19, %v595_v14  ;;  %v667_v60 = vmul.f32 0.25, %v515_v16  ;;  %v706_v52 = vmul.f32 0.5, %v515_v16  ;;  %v412_v2 = vadd.f32 %v376_v53, %v1610_v37  ;;  %v1677_v16 = vld [vmem:[%s1409_s17 + $0xc8] sm:$0xff] }
  0x56   : > { %v707_v61 = vmul.f32 0.5, %v643_v22  ;;  %v932_v62 = vmul.f32 0.25, %v643_v22  ;;  %v816_v63 = vrot.slane %v705_v59, 1  ;;  %v1025_v0 = vrot.slane %v666_v58, 2 }
  0x57   : > { %v451_v3 = vrot.slane %v411_v25, 1  ;;  %v817_v4 = vrot.slane %v706_v52, 1  ;;  %v1026_v6 = vrot.slane %v667_v60, 2  ;;  %v516_v9 = vrot.slane %v411_v25, 7 }
  0x58   : > { %v819_v7 = vrot.slane %v707_v61, 1  ;;  %v1028_v8 = vrot.slane %v932_v62, 2  ;;  %v517_v17 = vrot.slane %v412_v2, 7  ;;  %v596_v10 = vrot.slane %v412_v2, 5 }
  0x59   : > { %v345_v11 = vmul.f32 0.5, %v281_v15  ;;  %v818_v13 = vsel %vm780_vm1, %v816_v63, %v817_v4  ;;  %v1027_v57 = vsel %vm989_vm2, %v1025_v0, %v1026_v6  ;;  %v628_v33 = vsel %vm491_vm0, %v451_v3, %v516_v9 }
  0x5a   : > { %v820_v21 = vsel %vm780_vm1, %v817_v4, %v819_v7  ;;  %v1029_v24 = vsel %vm989_vm2, %v1026_v6, %v1028_v8  ;;  %v907_v26 = vadd.f32 %v818_v13, %v666_v58  ;;  %v518_v46 = vsel %vm491_vm0, %v516_v9, %v517_v17 }
  0x5b   : > { %v908_v34 = vadd.f32 %v820_v21, %v667_v60  ;;  %v668_v31 = vmul.f32 0.25, %v628_v33  ;;  %v669_v15 = vmul.f32 0.25, %v518_v46  ;;  %v708_v27 = vmul.f32 0.5, %v628_v33 }
  0x5c   : > { %v709_v32 = vmul.f32 0.5, %v518_v46  ;;  %v1116_v35 = vadd.f32 %v1027_v57, %v907_v26  ;;  %v644_v39 = vsel %vm491_vm0, %v517_v17, %v596_v10  ;;  %v346_v18 = vmul.f32 0.5, %v1599_v23 }
  0x5d   : > { %v1117_v38 = vadd.f32 %v1029_v24, %v908_v34  ;;  %v821_v42 = vrot.slane %v708_v27, 1  ;;  %v1030_v28 = vrot.slane %v668_v31, 2  ;;  %v1031_v41 = vrot.slane %v669_v15, 2 }
  0x5e   : > { %v822_v43 = vrot.slane %v709_v32, 1  ;;  %1149 = vst.msk [vmem:[%s1472_s23 + $0x70] sm:$0xff] %vm1134_vm3, %v1116_v35  ;;  %v710_v44 = vmul.f32 0.5, %v644_v39  ;;  %v933_v45 = vmul.f32 0.25, %v644_v39  ;;  %v377_v47 = vadd.f32 %v345_v11, %v1572_v30 }
  0x5f   : > { %1150 = vst.msk [vmem:[%s1472_s23 + $0x78] sm:$0xff] %vm1134_vm3, %v1117_v38  ;;  %v378_v29 = vadd.f32 %v346_v18, %v1581_v40  ;;  %v1032_v1 = vsel %vm989_vm2, %v1030_v28, %v1031_v41  ;;  %v1667_v51 = vmul.f32 0.25, %v285_v12  ;;  %v1670_v5 = vmul.f32 0.25, %v1654_v20 }
  0x60   : > { %v823_v23 = vsel %vm780_vm1, %v821_v42, %v822_v43  ;;  %v824_v14 = vrot.slane %v710_v44, 1  ;;  %v1033_v53 = vrot.slane %v933_v45, 2  ;;  %v413_v54 = vadd.f32 %v377_v47, %v1634_v55 }
  0x61   : > { %v909_v19 = vadd.f32 %v823_v23, %v668_v31  ;;  %v414_v30 = vadd.f32 %v378_v29, %v1637_v56  ;;  %v347_v40 = vmul.f32 0.5, %v1622_v48  ;;  %v348_v25 = vmul.f32 0.5, %v1625_v49 }
  0x62   : > { %v1680_v58 = vmul.f32 0.25, %v1663_v50  ;;  %v825_v22 = vsel %vm780_vm1, %v822_v43, %v824_v14  ;;  %v1034_v60 = vsel %vm989_vm2, %v1031_v41, %v1033_v53  ;;  %v452_v52 = vrot.slane %v413_v54, 1 }
  0x63   : > { %v1118_v59 = vadd.f32 %v1032_v1, %v909_v19  ;;  %v910_v61 = vadd.f32 %v825_v22, %v669_v15  ;;  %v519_v62 = vrot.slane %v413_v54, 7  ;;  %v520_v63 = vrot.slane %v414_v30, 7  ;;  %v289_v1 = vld [vmem:[%s1409_s17 + $0xd0] sm:$0xff]  ;;  %v1707_v19 = vld [vmem:[%s1409_s17 + $0xd8] sm:$0xff] }
  0x64   : > { %v597_v0 = vrot.slane %v414_v30, 5  ;;  %v379_v48 = vadd.f32 %v347_v40, %v1607_v36  ;;  %v380_v49 = vadd.f32 %v348_v25, %v1610_v37  ;;  %v1689_v2 = vmul.f32 0.25, %v1677_v16 }
  0x65   : > { %1151 = vst.msk [vmem:[%s1472_s23 + $0x80] sm:$0xff] %vm1134_vm3, %v1118_v59  ;;  %v349_v3 = vmul.f32 0.5, %v285_v12  ;;  %v1119_v4 = vadd.f32 %v1034_v60, %v910_v61  ;;  %v521_v6 = vsel %vm491_vm0, %v519_v62, %v520_v63  ;;  %v629_v7 = vsel %vm491_vm0, %v452_v52, %v519_v62 }
  0x66   : > { %v645_v8 = vsel %vm491_vm0, %v520_v63, %v597_v0  ;;  %v670_v9 = vmul.f32 0.25, %v629_v7  ;;  %v671_v17 = vmul.f32 0.25, %v521_v6  ;;  %v711_v10 = vmul.f32 0.5, %v629_v7 }
  0x67   : > { %v712_v11 = vmul.f32 0.5, %v521_v6  ;;  %1152 = vst.msk [vmem:[%s1472_s23 + $0x88] sm:$0xff] %vm1134_vm3, %v1119_v4  ;;  %v713_v36 = vmul.f32 0.5, %v645_v8  ;;  %v934_v13 = vmul.f32 0.25, %v645_v8  ;;  %v415_v37 = vadd.f32 %v379_v48, %v1667_v51 }
  0x68   : > { %v416_v57 = vadd.f32 %v380_v49, %v1670_v5  ;;  %v826_v21 = vrot.slane %v711_v10, 1  ;;  %v1035_v26 = vrot.slane %v670_v9, 2  ;;  %v1036_v34 = vrot.slane %v671_v17, 2  ;;  %v1733_v10 = vld [vmem:[%s1409_s17 + $0xe8] sm:$0xff] }
  0x69   : > { %v827_v24 = vrot.slane %v712_v11, 1  ;;  %v829_v46 = vrot.slane %v713_v36, 1  ;;  %v1038_v33 = vrot.slane %v934_v13, 2  ;;  %v453_v31 = vrot.slane %v415_v37, 1 }
  0x6a   : > { %v522_v15 = vrot.slane %v415_v37, 7  ;;  %v1037_v32 = vsel %vm989_vm2, %v1035_v26, %v1036_v34  ;;  %v523_v35 = vrot.slane %v416_v57, 7  ;;  %v598_v38 = vrot.slane %v416_v57, 5 }
  0x6b   : > { %v828_v27 = vsel %vm780_vm1, %v826_v21, %v827_v24  ;;  %v830_v18 = vsel %vm780_vm1, %v827_v24, %v829_v46  ;;  %v1039_v12 = vsel %vm989_vm2, %v1036_v34, %v1038_v33  ;;  %v350_v22 = vmul.f32 0.5, %v1654_v20 }
  0x6c   : > { %v911_v39 = vadd.f32 %v828_v27, %v670_v9  ;;  %v630_v42 = vsel %vm491_vm0, %v453_v31, %v522_v15  ;;  %v912_v43 = vadd.f32 %v830_v18, %v671_v17  ;;  %v524_v28 = vsel %vm491_vm0, %v522_v15, %v523_v35  ;;  %v1730_v17 = vld [vmem:[%s1409_s17 + $0xe0] sm:$0xff] }
  0x6d   : > { %v672_v41 = vmul.f32 0.25, %v630_v42  ;;  %v714_v44 = vmul.f32 0.5, %v630_v42  ;;  %v673_v47 = vmul.f32 0.25, %v524_v28  ;;  %v715_v29 = vmul.f32 0.5, %v524_v28 }
  0x6e   : > { %v1120_v45 = vadd.f32 %v1037_v32, %v911_v39  ;;  %v646_v23 = vsel %vm491_vm0, %v523_v35, %v598_v38  ;;  %v1121_v14 = vadd.f32 %v1039_v12, %v912_v43  ;;  %v381_v52 = vadd.f32 %v349_v3, %v1634_v55 }
  0x6f   : > { %v831_v53 = vrot.slane %v714_v44, 1  ;;  %v1040_v54 = vrot.slane %v672_v41, 2  ;;  %v716_v30 = vmul.f32 0.5, %v646_v23  ;;  %v832_v40 = vrot.slane %v715_v29, 1 }
  0x70   : > { %1153 = vst.msk [vmem:[%s1472_s23 + $0x90] sm:$0xff] %vm1134_vm3, %v1120_v45  ;;  %v1041_v25 = vrot.slane %v673_v47, 2  ;;  %v935_v59 = vmul.f32 0.25, %v646_v23  ;;  %1154 = vst.msk [vmem:[%s1472_s23 + $0x98] sm:$0xff] %vm1134_vm3, %v1121_v14  ;;  %v1715_v61 = vmul.f32 0.25, %v289_v1  ;;  %v1718_v62 = vmul.f32 0.25, %v1707_v19 }
  0x71   : > { %v834_v60 = vrot.slane %v716_v30, 1  ;;  %v833_v63 = vsel %vm780_vm1, %v831_v53, %v832_v40  ;;  %v382_v49 = vadd.f32 %v350_v22, %v1637_v56  ;;  %v417_v6 = vadd.f32 %v381_v52, %v1680_v58 }
  0x72   : > { %v1042_v0 = vsel %vm989_vm2, %v1040_v54, %v1041_v25  ;;  %v1043_v48 = vrot.slane %v935_v59, 2  ;;  %v913_v20 = vadd.f32 %v833_v63, %v672_v41  ;;  %v351_v55 = vmul.f32 0.5, %v1663_v50 }
  0x73   : > { %v835_v4 = vsel %vm780_vm1, %v832_v40, %v834_v60  ;;  %v418_v8 = vadd.f32 %v382_v49, %v1689_v2  ;;  %v352_v9 = vmul.f32 0.5, %v1677_v16  ;;  %v454_v11 = vrot.slane %v417_v6, 1 }
  0x74   : > { %v914_v3 = vadd.f32 %v835_v4, %v673_v47  ;;  %v1044_v7 = vsel %vm989_vm2, %v1041_v25, %v1043_v48  ;;  %v1122_v56 = vadd.f32 %v1042_v0, %v913_v20  ;;  %v525_v36 = vrot.slane %v417_v6, 7 }
  0x75   : > { %v383_v13 = vadd.f32 %v351_v55, %v1667_v51  ;;  %v526_v57 = vrot.slane %v418_v8, 7  ;;  %v599_v50 = vrot.slane %v418_v8, 5  ;;  %v384_v21 = vadd.f32 %v352_v9, %v1670_v5 }
  0x76   : > { %v1123_v37 = vadd.f32 %v1044_v7, %v914_v3  ;;  %1155 = vst.msk [vmem:[%s1472_s23 + $0xa0] sm:$0xff] %vm1134_vm3, %v1122_v56  ;;  %v631_v24 = vsel %vm491_vm0, %v454_v11, %v525_v36  ;;  %v1742_v26 = vmul.f32 0.25, %v1730_v17  ;;  %v1745_v34 = vmul.f32 0.25, %v1733_v10 }
  0x77   : > { %v419_v16 = vadd.f32 %v383_v13, %v1715_v61  ;;  %v527_v51 = vsel %vm491_vm0, %v525_v36, %v526_v57  ;;  %v674_v46 = vmul.f32 0.25, %v631_v24  ;;  %v717_v33 = vmul.f32 0.5, %v631_v24 }
  0x78   : > { %1156 = vst.msk [vmem:[%s1472_s23 + $0xa8] sm:$0xff] %vm1134_vm3, %v1123_v37  ;;  %v647_v5 = vsel %vm491_vm0, %v526_v57, %v599_v50  ;;  %v675_v31 = vmul.f32 0.25, %v527_v51  ;;  %v718_v15 = vmul.f32 0.5, %v527_v51  ;;  %v420_v39 = vadd.f32 %v384_v21, %v1718_v62  ;;  %v293_v50 = vld [vmem:[%s1409_s17 + $0xf0] sm:$0xff] }
  0x79   : > { %v719_v27 = vmul.f32 0.5, %v647_v5  ;;  %v936_v32 = vmul.f32 0.25, %v647_v5  ;;  %v836_v35 = vrot.slane %v717_v33, 1  ;;  %v1045_v38 = vrot.slane %v674_v46, 2 }
  0x7a   : > { %v455_v18 = vrot.slane %v419_v16, 1  ;;  %v837_v12 = vrot.slane %v718_v15, 1  ;;  %v1046_v42 = vrot.slane %v675_v31, 2  ;;  %v528_v41 = vrot.slane %v419_v16, 7 }
  0x7b   : > { %v839_v43 = vrot.slane %v719_v27, 1  ;;  %v1048_v28 = vrot.slane %v936_v32, 2  ;;  %v529_v44 = vrot.slane %v420_v39, 7  ;;  %v600_v45 = vrot.slane %v420_v39, 5 }
  0x7c   : > { %v353_v47 = vmul.f32 0.5, %v289_v1  ;;  %v838_v29 = vsel %vm780_vm1, %v836_v35, %v837_v12  ;;  %v1047_v23 = vsel %vm989_vm2, %v1045_v38, %v1046_v42  ;;  %v632_v25 = vsel %vm491_vm0, %v455_v18, %v528_v41 }
  0x7d   : > { %v840_v14 = vsel %vm780_vm1, %v837_v12, %v839_v43  ;;  %v1049_v53 = vsel %vm989_vm2, %v1046_v42, %v1048_v28  ;;  %v915_v54 = vadd.f32 %v838_v29, %v674_v46  ;;  %v530_v40 = vsel %vm491_vm0, %v528_v41, %v529_v44 }
  0x7e   : > { %v916_v30 = vadd.f32 %v840_v14, %v675_v31  ;;  %v676_v59 = vmul.f32 0.25, %v632_v25  ;;  %v677_v22 = vmul.f32 0.25, %v530_v40  ;;  %v720_v60 = vmul.f32 0.5, %v632_v25 }
  0x7f   : > { %v721_v1 = vmul.f32 0.5, %v530_v40  ;;  %v1124_v52 = vadd.f32 %v1047_v23, %v915_v54  ;;  %v648_v0 = vsel %vm491_vm0, %v529_v44, %v600_v45  ;;  %v354_v48 = vmul.f32 0.5, %v1707_v19 }
  0x80   : > { %v1125_v63 = vadd.f32 %v1049_v53, %v916_v30  ;;  %v841_v49 = vrot.slane %v720_v60, 1  ;;  %v1050_v4 = vrot.slane %v676_v59, 2  ;;  %v1051_v6 = vrot.slane %v677_v22, 2 }
  0x81   : > { %v842_v20 = vrot.slane %v721_v1, 1  ;;  %1157 = vst.msk [vmem:[%s1472_s23 + $0xb0] sm:$0xff] %vm1134_vm3, %v1124_v52  ;;  %v722_v55 = vmul.f32 0.5, %v648_v0  ;;  %v937_v3 = vmul.f32 0.25, %v648_v0  ;;  %v385_v7 = vadd.f32 %v353_v47, %v1680_v58  ;;  %v294_v58 = vld [vmem:[%s1409_s17 + $0xf8] sm:$0xff] }
  0x82   : > { %1158 = vst.msk [vmem:[%s1472_s23 + $0xb8] sm:$0xff] %vm1134_vm3, %v1125_v63  ;;  %v386_v8 = vadd.f32 %v354_v48, %v1689_v2  ;;  %v1052_v19 = vsel %vm989_vm2, %v1050_v4, %v1051_v6  ;;  %v355_v56 = vmul.f32 0.5, %v1730_v17  ;;  %v356_v11 = vmul.f32 0.5, %v1733_v10 }
  0x83   : > { %v843_v9 = vsel %vm780_vm1, %v841_v49, %v842_v20  ;;  %v844_v13 = vrot.slane %v722_v55, 1  ;;  %v1053_v37 = vrot.slane %v937_v3, 2  ;;  %v421_v57 = vadd.f32 %v385_v7, %v1742_v26 }
  0x84   : > { %v917_v36 = vadd.f32 %v843_v9, %v676_v59  ;;  %v422_v21 = vadd.f32 %v386_v8, %v1745_v34  ;;  %v387_v2 = vadd.f32 %v355_v56, %v1715_v61  ;;  %v388_v24 = vadd.f32 %v356_v11, %v1718_v62  ;;  %v262_v9 = vld [vmem:[%s1414_s20 + $0x18] sm:$0xff] }
  0x85   : > { %v391_v16 = vmul.f32 0.25, %v293_v50  ;;  %v845_v17 = vsel %vm780_vm1, %v842_v20, %v844_v13  ;;  %v1054_v10 = vsel %vm989_vm2, %v1051_v6, %v1053_v37  ;;  %v456_v46 = vrot.slane %v421_v57, 1 }
  0x86   : > { %v1126_v51 = vadd.f32 %v1052_v19, %v917_v36  ;;  %v918_v33 = vadd.f32 %v845_v17, %v677_v22  ;;  %v531_v5 = vrot.slane %v421_v57, 7  ;;  %v532_v31 = vrot.slane %v422_v21, 7 }
  0x87   : > { %v601_v15 = vrot.slane %v422_v21, 5  ;;  %v392_v27 = vmul.f32 0.25, %v294_v58  ;;  %v423_v32 = vadd.f32 %v391_v16, %v387_v2  ;;  %v357_v35 = vmul.f32 0.5, %v293_v50 }
  0x88   : > { %1159 = vst.msk [vmem:[%s1472_s23 + $0xc0] sm:$0xff] %vm1134_vm3, %v1126_v51  ;;  %v358_v61 = vmul.f32 0.5, %v294_v58  ;;  %v1127_v38 = vadd.f32 %v1054_v10, %v918_v33  ;;  %v533_v62 = vsel %vm491_vm0, %v531_v5, %v532_v31  ;;  %v633_v39 = vsel %vm491_vm0, %v456_v46, %v531_v5 }
  0x89   : > { %v649_v18 = vsel %vm491_vm0, %v532_v31, %v601_v15  ;;  %v678_v12 = vmul.f32 0.25, %v633_v39  ;;  %v679_v42 = vmul.f32 0.25, %v533_v62  ;;  %v723_v43 = vmul.f32 0.5, %v633_v39 }
  0x8a   : > { %v724_v28 = vmul.f32 0.5, %v533_v62  ;;  %1160 = vst.msk [vmem:[%s1472_s23 + $0xc8] sm:$0xff] %vm1134_vm3, %v1127_v38  ;;  %v725_v41 = vmul.f32 0.5, %v649_v18  ;;  %v938_v44 = vmul.f32 0.25, %v649_v18  ;;  %v424_v45 = vadd.f32 %v392_v27, %v388_v24 }
  0x8b   : > { %v457_v47 = vrot.slane %v423_v32, 1  ;;  %v846_v29 = vrot.slane %v723_v43, 1  ;;  %v1055_v14 = vrot.slane %v678_v12, 2  ;;  %v1056_v53 = vrot.slane %v679_v42, 2 }
  0x8c   : > { %v847_v23 = vrot.slane %v724_v28, 1  ;;  %v849_v54 = vrot.slane %v725_v41, 1  ;;  %v1058_v30 = vrot.slane %v938_v44, 2  ;;  %v534_v40 = vrot.slane %v423_v32, 7 }
  0x8d   : > { %v535_v25 = vrot.slane %v424_v45, 7  ;;  %v1057_v22 = vsel %vm989_vm2, %v1055_v14, %v1056_v53  ;;  %v602_v60 = vrot.slane %v424_v45, 5  ;;  %v389_v1 = vadd.f32 %v357_v35, %v1742_v26  ;;  %v261_v26 = vld [vmem:[%s1414_s20 + $0x10] sm:$0xff] }
  0x8e   : > { %v848_v59 = vsel %vm780_vm1, %v846_v29, %v847_v23  ;;  %v850_v63 = vsel %vm780_vm1, %v847_v23, %v849_v54  ;;  %v1059_v0 = vsel %vm989_vm2, %v1056_v53, %v1058_v30  ;;  %v634_v20 = vsel %vm491_vm0, %v457_v47, %v534_v40 }
  0x8f   : > { %v919_v52 = vadd.f32 %v848_v59, %v678_v12  ;;  %v536_v48 = vsel %vm491_vm0, %v534_v40, %v535_v25  ;;  %v920_v49 = vadd.f32 %v850_v63, %v679_v42  ;;  %v680_v3 = vmul.f32 0.25, %v634_v20 }
  0x90   : > { %v681_v4 = vmul.f32 0.25, %v536_v48  ;;  %v727_v6 = vmul.f32 0.5, %v536_v48  ;;  %v726_v7 = vmul.f32 0.5, %v634_v20  ;;  %v650_v8 = vsel %vm491_vm0, %v535_v25, %v602_v60 }
  0x91   : > { %v1128_v55 = vadd.f32 %v1057_v22, %v919_v52  ;;  %v1129_v19 = vadd.f32 %v1059_v0, %v920_v49  ;;  %v728_v36 = vmul.f32 0.5, %v650_v8  ;;  %v1060_v37 = vrot.slane %v680_v3, 2 }
  0x92   : > { %v852_v56 = vrot.slane %v727_v6, 1  ;;  %v1061_v11 = vrot.slane %v681_v4, 2  ;;  %v851_v13 = vrot.slane %v726_v7, 1  ;;  %v939_v57 = vmul.f32 0.25, %v650_v8 }
  0x93   : > { %1161 = vst.msk [vmem:[%s1472_s23 + $0xd0] sm:$0xff] %vm1134_vm3, %v1128_v55  ;;  %v390_v50 = vadd.f32 %v358_v61, %v1745_v34  ;;  %1162 = vst.msk [vmem:[%s1472_s23 + $0xd8] sm:$0xff] %vm1134_vm3, %v1129_v19  ;;  %v854_v21 = vrot.slane %v728_v36, 1  ;;  %v393_v58 = vmul.f32 0.25, %v261_v26  ;;  %v394_v2 = vmul.f32 0.25, %v262_v9 }
  0x94   : > { %v853_v24 = vsel %vm780_vm1, %v851_v13, %v852_v56  ;;  %v1062_v16 = vsel %vm989_vm2, %v1060_v37, %v1061_v11  ;;  %v1063_v51 = vrot.slane %v939_v57, 2 }
  0x95   : > { %v921_v17 = vadd.f32 %v853_v24, %v680_v3  ;;  %v855_v10 = vsel %vm780_vm1, %v852_v56, %v854_v21  ;;  %v425_v46 = vadd.f32 %v393_v58, %v389_v1  ;;  %v426_v33 = vadd.f32 %v394_v2, %v390_v50 }
  0x96   : > { %v922_v5 = vadd.f32 %v855_v10, %v681_v4  ;;  %v1064_v34 = vsel %vm989_vm2, %v1061_v11, %v1063_v51 }
  0x97   : > { %v1130_v31 = vadd.f32 %v1062_v16, %v921_v17  ;;  %v458_v15 = vrot.slane %v425_v46, 1  ;;  %v537_v27 = vrot.slane %v425_v46, 7  ;;  %v538_v32 = vrot.slane %v426_v33, 7 }
  0x98   : > { %v1131_v35 = vadd.f32 %v1064_v34, %v922_v5  ;;  %v603_v61 = vrot.slane %v426_v33, 5 }
  0x99   : > { %1163 = vst.msk [vmem:[%s1472_s23 + $0xe0] sm:$0xff] %vm1134_vm3, %v1130_v31  ;;  %v539_v38 = vsel %vm491_vm0, %v537_v27, %v538_v32  ;;  %v635_v62 = vsel %vm491_vm0, %v458_v15, %v537_v27 }
  0x9a   : > { %1164 = vst.msk [vmem:[%s1472_s23 + $0xe8] sm:$0xff] %vm1134_vm3, %v1131_v35  ;;  %v682_v39 = vmul.f32 0.25, %v635_v62  ;;  %v683_v18 = vmul.f32 0.25, %v539_v38  ;;  %v729_v12 = vmul.f32 0.5, %v635_v62  ;;  %v730_v42 = vmul.f32 0.5, %v539_v38 }
  0x9b   : > { %v651_v43 = vsel %vm491_vm0, %v538_v32, %v603_v61 }
  0x9c   : > { %v856_v28 = vrot.slane %v729_v12, 1  ;;  %v857_v41 = vrot.slane %v730_v42, 1  ;;  %v1065_v44 = vrot.slane %v682_v39, 2  ;;  %v1066_v45 = vrot.slane %v683_v18, 2 }
  0x9d   : > { %v731_v47 = vmul.f32 0.5, %v651_v43  ;;  %v940_v29 = vmul.f32 0.25, %v651_v43 }
  0x9e   : > { %v858_v23 = vsel %vm780_vm1, %v856_v28, %v857_v41  ;;  %v1067_v14 = vsel %vm989_vm2, %v1065_v44, %v1066_v45 }
  0x9f   : > { %v923_v53 = vadd.f32 %v858_v23, %v682_v39  ;;  %v859_v54 = vrot.slane %v731_v47, 1  ;;  %v1068_v30 = vrot.slane %v940_v29, 2 }
  0xa1   : > { %v1132_v40 = vadd.f32 %v1067_v14, %v923_v53  ;;  %v860_v25 = vsel %vm780_vm1, %v857_v41, %v859_v54  ;;  %v1069_v59 = vsel %vm989_vm2, %v1066_v45, %v1068_v30 }
  0xa2   : > { %v924_v22 = vadd.f32 %v860_v25, %v683_v18 }
  0xa3   : > { %1165 = vst.msk [vmem:[%s1472_s23 + $0xf0] sm:$0xff] %vm1134_vm3, %v1132_v40 }
  0xa4   : > { %v1133_v60 = vadd.f32 %v1069_v59, %v924_v22 }
  0xa6   : > { %1166 = vst.msk [vmem:[%s1472_s23 + $0xf8] sm:$0xff] %vm1134_vm3, %v1133_v60 }
  0xa7 PF: > { %s12_s11 = sadd.s32 1, %s1365_s11   ;;  %s1831_s9 = smov %s1361_s10 }
  0xa8   : > { %p9_p5 = scmp.ge.s32.totalorder %s12_s11, 4   ;;  %s1832_s10 = smov %s1834_s12 }
  0xaa   :  { %11 = sbr.rel (!%p9_p5) target bundleno = 2 (0x2), region = 61 }

</bundles_post_ra>
